<compile_context>
chip_gen: v7x
topology: tpu7x:2x2x1
jax: 0.10.0
libtpu: 0.0.40
codegen_flags: <defaults>
</compile_context>

<pallas_src>
import functools

import jax
import jax.numpy as jnp
from jax.experimental import pallas as pl
from jax.experimental.pallas import tpu as pltpu


def _round_up(x, m):
    return (x + m - 1) // m * m


# ---------------------------------------------------------------------------
# Kernels
# ---------------------------------------------------------------------------

def _conv_stats_kernel(p_ref, w_ref, conv_ref, sum_ref, sq_ref):
    """Pass 1 (bn_act=True): conv tile = patches @ weights (bf16 in, f32 acc).

    The conv tile is streamed back to HBM while per-channel sum and
    sum-of-squares accumulate across the row-tile grid axis into VMEM-resident
    (1, TILE_N) outputs (their BlockSpec returns the same block for every row
    tile, so they live in VMEM for the whole 'arbitrary' row axis).
    """
    @pl.when(pl.program_id(1) == 0)
    def _init():
        sum_ref[...] = jnp.zeros_like(sum_ref)
        sq_ref[...] = jnp.zeros_like(sq_ref)

    conv = jnp.dot(p_ref[...], w_ref[...], preferred_element_type=jnp.float32)
    conv_ref[...] = conv
    # Single-pass sum / sum-of-squares (axis-0 sublane reductions -> XLU slot,
    # off the MXU/VALU critical path).
    sum_ref[...] += jnp.sum(conv, axis=0, keepdims=True)
    sq_ref[...] += jnp.sum(conv * conv, axis=0, keepdims=True)


def _bn_relu_kernel(conv_ref, sum_ref, sq_ref, gamma_ref, beta_ref, out_ref, *,
                    inv_count, eps):
    """Pass 2 (bn_act=True): relu((conv - mean) * rsqrt(var + eps) * gamma + beta).

    Folded into one per-channel scale/shift so the per-element work is a single
    fused multiply-add plus a max; rsqrt runs on the EUP slot.
    """
    mean = sum_ref[...] * inv_count
    var = sq_ref[...] * inv_count - mean * mean          # biased variance (BN fwd)
    scale = jax.lax.rsqrt(var + eps) * gamma_ref[...]
    shift = beta_ref[...] - mean * scale
    out_ref[...] = jnp.maximum(conv_ref[...] * scale + shift, 0.0)


def _conv_bias_kernel(p_ref, w_ref, b_ref, out_ref):
    """bn_act=False path: conv + bias, one (TILE_M, TILE_N) tile per grid step."""
    conv = jnp.dot(p_ref[...], w_ref[...], preferred_element_type=jnp.float32)
    out_ref[...] = conv + b_ref[...]


# ---------------------------------------------------------------------------
# JAX-side glue (im2col, layout)
# ---------------------------------------------------------------------------

def _im2col(x_nhwc, kh, kw, stride, padding):
    # TODO(synk): move patch construction into the kernel (per-tap accumulation
    # over a KH*KW grid axis with a VMEM f32 accumulator) to remove the KH*KW x
    # HBM traffic blowup of materializing im2col patches.
    n, h, w, c = x_nhwc.shape
    xp = jnp.pad(x_nhwc, ((0, 0), (padding, padding), (padding, padding), (0, 0)))
    h_out = (h + 2 * padding - kh) // stride + 1
    w_out = (w + 2 * padding - kw) // stride + 1
    cols = []
    for i in range(kh):
        for j in range(kw):
            cols.append(xp[:, i:i + stride * h_out:stride,
                           j:j + stride * w_out:stride, :])
    patches = jnp.concatenate(cols, axis=-1)            # (N, Ho, Wo, KH*KW*Cin)
    return patches.reshape(n * h_out * w_out, kh * kw * c), h_out, w_out


def cnn_block_forward(x_nchw, weight_oihw, gamma, beta, bias, *,
                      stride=1, padding=1, bn_act=True, eps=1e-5,
                      tile_m=512, tile_n=128):
    """Pallas implementation of CNNBlock.forward.  Input/output are NCHW.

    tile_m: row tile (N*Ho*Wo axis). 512-1024 for v6e, 256-512 for v5e/v7x
            (64 MiB VMEM on v7x). tile_n: output-channel tile (lane dim), 128+.
    """
    n, cin, h, w = x_nchw.shape
    cout, _, kh, kw = weight_oihw.shape

    # NCHW -> NHWC glue.  TODO(synk): in a full model keep activations NHWC
    # across layers so these two HBM round-trip transposes disappear.
    x_nhwc = jnp.transpose(x_nchw, (0, 2, 3, 1)).astype(jnp.float32)
    patches, h_out, w_out = _im2col(x_nhwc, kh, kw, stride, padding)
    rows = n * h_out * w_out
    k = kh * kw * cin

    # Lane/tile-friendly padding: Cout -> multiple of 128 (lane-dense stores,
    # full MXU columns), K -> multiple of 128 (aligned contraction),
    # rows -> multiple of TILE_M.  Padding is all zeros, so padded rows
    # contribute nothing to the BN sums and padded channels are sliced off.
    tile_m = min(tile_m, _round_up(rows, 128))
    k_pad = _round_up(k, 128)
    cout_pad = _round_up(cout, tile_n)
    rows_pad = _round_up(rows, tile_m)

    # bf16 MXU inputs; accumulation stays f32 inside the kernels.
    patches_p = jnp.pad(patches, ((0, rows_pad - rows), (0, k_pad - k))
                        ).astype(jnp.bfloat16)
    w_mat = jnp.transpose(weight_oihw, (2, 3, 1, 0)).reshape(k, cout)
    w_p = jnp.pad(w_mat.astype(jnp.float32),
                  ((0, k_pad - k), (0, cout_pad - cout))).astype(jnp.bfloat16)

    grid = (cout_pad // tile_n, rows_pad // tile_m)     # (cout tiles, row tiles)

    patch_spec = pl.BlockSpec((tile_m, k_pad), lambda j, i: (i, 0))
    w_spec = pl.BlockSpec((k_pad, tile_n), lambda j, i: (0, j))
    tile_spec = pl.BlockSpec((tile_m, tile_n), lambda j, i: (i, j))
    chan_spec = pl.BlockSpec((1, tile_n), lambda j, i: (0, j))

    # Explicit scoped-VMEM budget (above 16/32 MiB defaults, below v7x physical).
    vmem_limit = 48 * 1024 * 1024

    if bn_act:
        conv_full, ch_sum, ch_sq = pl.pallas_call(
            _conv_stats_kernel,
            out_shape=(
                jax.ShapeDtypeStruct((rows_pad, cout_pad), jnp.float32),
                jax.ShapeDtypeStruct((1, cout_pad), jnp.float32),
                jax.ShapeDtypeStruct((1, cout_pad), jnp.float32),
            ),
            grid=grid,
            in_specs=[patch_spec, w_spec],
            out_specs=(tile_spec, chan_spec, chan_spec),
            compiler_params=pltpu.CompilerParams(
                # Row-tile axis carries the stats accumulation -> 'arbitrary';
                # Cout-tile axis is independent -> 'parallel' (v7x megacore).
                dimension_semantics=("parallel", "arbitrary"),
                vmem_limit_bytes=vmem_limit),
        )(patches_p, w_p)

        gamma_p = jnp.pad(gamma.astype(jnp.float32), (0, cout_pad - cout),
                          constant_values=1.0).reshape(1, cout_pad)
        beta_p = jnp.pad(beta.astype(jnp.float32),
                         (0, cout_pad - cout)).reshape(1, cout_pad)

        # Padded rows are zero -> they add 0 to sum/sumsq; divide by true count.
        kernel2 = functools.partial(_bn_relu_kernel,
                                    inv_count=1.0 / float(rows), eps=float(eps))
        out_flat = pl.pallas_call(
            kernel2,
            out_shape=jax.ShapeDtypeStruct((rows_pad, cout_pad), jnp.float32),
            grid=grid,
            in_specs=[tile_spec, chan_spec, chan_spec, chan_spec, chan_spec],
            out_specs=tile_spec,
            compiler_params=pltpu.CompilerParams(
                dimension_semantics=("parallel", "parallel"),
                vmem_limit_bytes=vmem_limit),
        )(conv_full, ch_sum, ch_sq, gamma_p, beta_p)
    else:
        bias_p = jnp.pad(bias.astype(jnp.float32),
                         (0, cout_pad - cout)).reshape(1, cout_pad)
        out_flat = pl.pallas_call(
            _conv_bias_kernel,
            out_shape=jax.ShapeDtypeStruct((rows_pad, cout_pad), jnp.float32),
            grid=grid,
            in_specs=[patch_spec, w_spec, chan_spec],
            out_specs=tile_spec,
            compiler_params=pltpu.CompilerParams(
                dimension_semantics=("parallel", "parallel"),
                vmem_limit_bytes=vmem_limit),
        )(patches_p, w_p, bias_p)

    out = out_flat[:rows, :cout].reshape(n, h_out, w_out, cout)
    return jnp.transpose(out, (0, 3, 1, 2))             # back to NCHW


# ---------------------------------------------------------------------------
# Pure-JAX reference (f32 throughout)
# ---------------------------------------------------------------------------

def _reference(x, w, gamma, beta, bias, *, stride=1, padding=1, bn_act=True,
               eps=1e-5):
    conv = jax.lax.conv_general_dilated(
        x, w, window_strides=(stride, stride),
        padding=((padding, padding), (padding, padding)),
        dimension_numbers=("NCHW", "OIHW", "NCHW"))
    if not bn_act:
        return conv + bias.reshape(1, -1, 1, 1)
    mean = jnp.mean(conv, axis=(0, 2, 3), keepdims=True)
    var = jnp.mean(jnp.square(conv - mean), axis=(0, 2, 3), keepdims=True)
    y = (conv - mean) * jax.lax.rsqrt(var + eps) * gamma.reshape(1, -1, 1, 1) \
        + beta.reshape(1, -1, 1, 1)
    return jnp.maximum(y, 0.0)


if __name__ == "__main__":
    key = jax.random.PRNGKey(0)
    k_x, k_w, k_b = jax.random.split(key, 3)

    N, CIN, H, W = 2, 4, 16, 16
    COUT, KH, KW = 8, 3, 3

    x = jax.random.normal(k_x, (N, CIN, H, W), dtype=jnp.float32)
    weight = jax.random.normal(k_w, (COUT, CIN, KH, KW), dtype=jnp.float32) * 0.1
    gamma = jnp.ones((COUT,), dtype=jnp.float32)    # BatchNorm2d weight init
    beta = jnp.zeros((COUT,), dtype=jnp.float32)    # BatchNorm2d bias init
    bias = jax.random.normal(k_b, (COUT,), dtype=jnp.float32) * 0.1  # conv bias

    # Small tile_m so the toy shapes still exercise a multi-tile grid
    # (512 rows -> 4 row tiles) and the cross-tile BN reduction.
    fwd_bn = jax.jit(functools.partial(cnn_block_forward, stride=1, padding=1,
                                       bn_act=True, tile_m=128))
    out_bn = fwd_bn(x, weight, gamma, beta, bias)
    jax.block_until_ready(out_bn)
    ref_bn = _reference(x, weight, gamma, beta, bias, bn_act=True)
    assert out_bn.shape == (N, COUT, H, W)
    # bf16 MXU inputs -> slightly looser tolerance than a pure-f32 matmul.
    assert jnp.allclose(out_bn, ref_bn, atol=3e-2, rtol=3e-2), \
        float(jnp.max(jnp.abs(out_bn - ref_bn)))

    fwd_plain = jax.jit(functools.partial(cnn_block_forward, stride=1, padding=1,
                                          bn_act=False, tile_m=128))
    out_plain = fwd_plain(x, weight, gamma, beta, bias)
    jax.block_until_ready(out_plain)
    ref_plain = _reference(x, weight, gamma, beta, bias, bn_act=False)
    assert jnp.allclose(out_plain, ref_plain, atol=3e-2, rtol=3e-2), \
        float(jnp.max(jnp.abs(out_plain - ref_plain)))

    print("KERNEL_OK")
</pallas_src>

<mosaic_0001>
module attributes {stable_mosaic.version = 11 : i64} {
  func.func @_conv_stats_kernel(%arg0: i32, %arg1: i32, %arg2: memref<128x128xbf16, #tpu.memory_space<vmem>>, %arg3: memref<128x128xbf16, #tpu.memory_space<vmem>>, %arg4: memref<128x128xf32, #tpu.memory_space<vmem>>, %arg5: memref<1x128xf32, #tpu.memory_space<vmem>>, %arg6: memref<1x128xf32, #tpu.memory_space<vmem>>) attributes {dimension_semantics = [#tpu.dimension_semantics<parallel>, #tpu.dimension_semantics<arbitrary>], iteration_bounds = array<i64: 1, 4>, scalar_prefetch = 0 : i64, scratch_operands = 0 : i64, tpu.core_type = #tpu.core_type<tc>, window_params = [{transform_indices = @transform_0, window_bounds = array<i64: 128, 128>}, {transform_indices = @transform_1, window_bounds = array<i64: 128, 128>}, {transform_indices = @transform_2, window_bounds = array<i64: 128, 128>}, {transform_indices = @transform_3, window_bounds = array<i64: 1, 128>}, {transform_indices = @transform_4, window_bounds = array<i64: 1, 128>}]} {
    %c0_i32 = arith.constant 0 : i32
    %0 = arith.cmpi eq, %arg1, %c0_i32 : i32
    %1 = arith.extui %0 : i1 to i32
    %c0_i32_0 = arith.constant 0 : i32
    %2 = arith.cmpi ne, %1, %c0_i32_0 : i32
    scf.if %2 {
      %cst_16 = arith.constant 0.000000e+00 : f32
      %18 = vector.broadcast %cst_16 : f32 to vector<1x128xf32>
      %c0_17 = arith.constant 0 : index
      %c0_18 = arith.constant 0 : index
      %19 = vector.load %arg5[%c0_17, %c0_18] : memref<1x128xf32, #tpu.memory_space<vmem>>, vector<1x128xf32>
      tpu.vector_store %arg5[%c0_17, %c0_18], %18 {strides = array<i32>} : memref<1x128xf32, #tpu.memory_space<vmem>>, vector<1x128xf32>,
      %cst_19 = arith.constant 0.000000e+00 : f32
      %20 = vector.broadcast %cst_19 : f32 to vector<1x128xf32>
      %c0_20 = arith.constant 0 : index
      %c0_21 = arith.constant 0 : index
      %21 = vector.load %arg6[%c0_20, %c0_21] : memref<1x128xf32, #tpu.memory_space<vmem>>, vector<1x128xf32>
      tpu.vector_store %arg6[%c0_20, %c0_21], %20 {strides = array<i32>} : memref<1x128xf32, #tpu.memory_space<vmem>>, vector<1x128xf32>,
    } else {
    }
    %c0 = arith.constant 0 : index
    %c0_1 = arith.constant 0 : index
    %3 = vector.load %arg2[%c0, %c0_1] : memref<128x128xbf16, #tpu.memory_space<vmem>>, vector<128x128xbf16>
    %c0_2 = arith.constant 0 : index
    %c0_3 = arith.constant 0 : index
    %4 = vector.load %arg3[%c0_2, %c0_3] : memref<128x128xbf16, #tpu.memory_space<vmem>>, vector<128x128xbf16>
    %cst = arith.constant dense<0.000000e+00> : vector<128x128xf32>
    %5 = tpu.matmul %3, %4, %cst {dimension_numbers = #tpu.dot_dimension_numbers<[1], [0], [0], [1], [0, 0, 1, 1], [], []>} : vector<128x128xbf16>, vector<128x128xbf16>, vector<128x128xf32> -> vector<128x128xf32>
    %c0_4 = arith.constant 0 : index
    %c0_5 = arith.constant 0 : index
    %6 = vector.load %arg4[%c0_4, %c0_5] : memref<128x128xf32, #tpu.memory_space<vmem>>, vector<128x128xf32>
    tpu.vector_store %arg4[%c0_4, %c0_5], %5 {strides = array<i32>} : memref<128x128xf32, #tpu.memory_space<vmem>>, vector<128x128xf32>,
    %c0_6 = arith.constant 0 : index
    %c0_7 = arith.constant 0 : index
    %7 = vector.load %arg5[%c0_6, %c0_7] : memref<1x128xf32, #tpu.memory_space<vmem>>, vector<1x128xf32>
    %cst_8 = arith.constant dense<0.000000e+00> : vector<128xf32>
    %8 = vector.multi_reduction <add>, %5, %cst_8 [0] : vector<128x128xf32> to vector<128xf32>
    %9 = vector.shape_cast %8 : vector<128xf32> to vector<1x128xf32>
    %10 = arith.addf %7, %9 : vector<1x128xf32>
    %c0_9 = arith.constant 0 : index
    %c0_10 = arith.constant 0 : index
    %11 = vector.load %arg5[%c0_9, %c0_10] : memref<1x128xf32, #tpu.memory_space<vmem>>, vector<1x128xf32>
    tpu.vector_store %arg5[%c0_9, %c0_10], %10 {strides = array<i32>} : memref<1x128xf32, #tpu.memory_space<vmem>>, vector<1x128xf32>,
    %c0_11 = arith.constant 0 : index
    %c0_12 = arith.constant 0 : index
    %12 = vector.load %arg6[%c0_11, %c0_12] : memref<1x128xf32, #tpu.memory_space<vmem>>, vector<1x128xf32>
    %13 = arith.mulf %5, %5 : vector<128x128xf32>
    %cst_13 = arith.constant dense<0.000000e+00> : vector<128xf32>
    %14 = vector.multi_reduction <add>, %13, %cst_13 [0] : vector<128x128xf32> to vector<128xf32>
    %15 = vector.shape_cast %14 : vector<128xf32> to vector<1x128xf32>
    %16 = arith.addf %12, %15 : vector<1x128xf32>
    %c0_14 = arith.constant 0 : index
    %c0_15 = arith.constant 0 : index
    %17 = vector.load %arg6[%c0_14, %c0_15] : memref<1x128xf32, #tpu.memory_space<vmem>>, vector<1x128xf32>
    tpu.vector_store %arg6[%c0_14, %c0_15], %16 {strides = array<i32>} : memref<1x128xf32, #tpu.memory_space<vmem>>, vector<1x128xf32>,
    return
  }
  func.func @transform_0(%arg0: i32, %arg1: i32) -> (i32, i32) {
    %c0_i32 = arith.constant 0 : i32
    %c0_i32_0 = arith.constant 0 : i32
    return %arg1, %c0_i32 : i32, i32
  }
  func.func @transform_1(%arg0: i32, %arg1: i32) -> (i32, i32) {
    %c0_i32 = arith.constant 0 : i32
    %c0_i32_0 = arith.constant 0 : i32
    return %c0_i32, %arg0 : i32, i32
  }
  func.func @transform_2(%arg0: i32, %arg1: i32) -> (i32, i32) {
    %c0_i32 = arith.constant 0 : i32
    return %arg1, %arg0 : i32, i32
  }
  func.func @transform_3(%arg0: i32, %arg1: i32) -> (i32, i32) {
    %c0_i32 = arith.constant 0 : i32
    %c0_i32_0 = arith.constant 0 : i32
    return %c0_i32, %arg0 : i32, i32
  }
  func.func @transform_4(%arg0: i32, %arg1: i32) -> (i32, i32) {
    %c0_i32 = arith.constant 0 : i32
    %c0_i32_0 = arith.constant 0 : i32
    return %c0_i32, %arg0 : i32, i32
  }
}

module attributes {stable_mosaic.version = 11 : i64} {
  func.func @_bn_relu_kernel(%arg0: i32, %arg1: i32, %arg2: memref<128x128xf32, #tpu.memory_space<vmem>>, %arg3: memref<1x128xf32, #tpu.memory_space<vmem>>, %arg4: memref<1x128xf32, #tpu.memory_space<vmem>>, %arg5: memref<1x128xf32, #tpu.memory_space<vmem>>, %arg6: memref<1x128xf32, #tpu.memory_space<vmem>>, %arg7: memref<128x128xf32, #tpu.memory_space<vmem>>) attributes {dimension_semantics = [#tpu.dimension_semantics<parallel>, #tpu.dimension_semantics<parallel>], iteration_bounds = array<i64: 1, 4>, scalar_prefetch = 0 : i64, scratch_operands = 0 : i64, tpu.core_type = #tpu.core_type<tc>, window_params = [{transform_indices = @transform_0, window_bounds = array<i64: 128, 128>}, {transform_indices = @transform_1, window_bounds = array<i64: 1, 128>}, {transform_indices = @transform_2, window_bounds = array<i64: 1, 128>}, {transform_indices = @transform_3, window_bounds = array<i64: 1, 128>}, {transform_indices = @transform_4, window_bounds = array<i64: 1, 128>}, {transform_indices = @transform_5, window_bounds = array<i64: 128, 128>}]} {
    %c0 = arith.constant 0 : index
    %c0_0 = arith.constant 0 : index
    %0 = vector.load %arg3[%c0, %c0_0] : memref<1x128xf32, #tpu.memory_space<vmem>>, vector<1x128xf32>
    %cst = arith.constant 0.001953125 : f32
    %1 = vector.broadcast %cst : f32 to vector<1x128xf32>
    %2 = arith.mulf %0, %1 : vector<1x128xf32>
    %c0_1 = arith.constant 0 : index
    %c0_2 = arith.constant 0 : index
    %3 = vector.load %arg4[%c0_1, %c0_2] : memref<1x128xf32, #tpu.memory_space<vmem>>, vector<1x128xf32>
    %cst_3 = arith.constant 0.001953125 : f32
    %4 = vector.broadcast %cst_3 : f32 to vector<1x128xf32>
    %5 = arith.mulf %3, %4 : vector<1x128xf32>
    %6 = arith.mulf %2, %2 : vector<1x128xf32>
    %7 = arith.subf %5, %6 : vector<1x128xf32>
    %cst_4 = arith.constant 9.99999974E-6 : f32
    %8 = vector.broadcast %cst_4 : f32 to vector<1x128xf32>
    %9 = arith.addf %7, %8 : vector<1x128xf32>
    %10 = math.rsqrt %9 : vector<1x128xf32>
    %c0_5 = arith.constant 0 : index
    %c0_6 = arith.constant 0 : index
    %11 = vector.load %arg5[%c0_5, %c0_6] : memref<1x128xf32, #tpu.memory_space<vmem>>, vector<1x128xf32>
    %12 = arith.mulf %10, %11 : vector<1x128xf32>
    %c0_7 = arith.constant 0 : index
    %c0_8 = arith.constant 0 : index
    %13 = vector.load %arg6[%c0_7, %c0_8] : memref<1x128xf32, #tpu.memory_space<vmem>>, vector<1x128xf32>
    %14 = arith.mulf %2, %12 : vector<1x128xf32>
    %15 = arith.subf %13, %14 : vector<1x128xf32>
    %c0_9 = arith.constant 0 : index
    %c0_10 = arith.constant 0 : index
    %16 = vector.load %arg2[%c0_9, %c0_10] : memref<128x128xf32, #tpu.memory_space<vmem>>, vector<128x128xf32>
    %17 = vector.broadcast %12 : vector<1x128xf32> to vector<128x128xf32>
    %18 = arith.mulf %16, %17 : vector<128x128xf32>
    %19 = vector.broadcast %15 : vector<1x128xf32> to vector<128x128xf32>
    %20 = arith.addf %18, %19 : vector<128x128xf32>
    %cst_11 = arith.constant 0.000000e+00 : f32
    %21 = vector.broadcast %cst_11 : f32 to vector<128x128xf32>
    %22 = arith.maximumf %20, %21 : vector<128x128xf32>
    %c0_12 = arith.constant 0 : index
    %c0_13 = arith.constant 0 : index
    %23 = vector.load %arg7[%c0_12, %c0_13] : memref<128x128xf32, #tpu.memory_space<vmem>>, vector<128x128xf32>
    tpu.vector_store %arg7[%c0_12, %c0_13], %22 {strides = array<i32>} : memref<128x128xf32, #tpu.memory_space<vmem>>, vector<128x128xf32>,
    return
  }
  func.func @transform_0(%arg0: i32, %arg1: i32) -> (i32, i32) {
    %c0_i32 = arith.constant 0 : i32
    return %arg1, %arg0 : i32, i32
  }
  func.func @transform_1(%arg0: i32, %arg1: i32) -> (i32, i32) {
    %c0_i32 = arith.constant 0 : i32
    %c0_i32_0 = arith.constant 0 : i32
    return %c0_i32, %arg0 : i32, i32
  }
  func.func @transform_2(%arg0: i32, %arg1: i32) -> (i32, i32) {
    %c0_i32 = arith.constant 0 : i32
    %c0_i32_0 = arith.constant 0 : i32
    return %c0_i32, %arg0 : i32, i32
  }
  func.func @transform_3(%arg0: i32, %arg1: i32) -> (i32, i32) {
    %c0_i32 = arith.constant 0 : i32
    %c0_i32_0 = arith.constant 0 : i32
    return %c0_i32, %arg0 : i32, i32
  }
  func.func @transform_4(%arg0: i32, %arg1: i32) -> (i32, i32) {
    %c0_i32 = arith.constant 0 : i32
    %c0_i32_0 = arith.constant 0 : i32
    return %c0_i32, %arg0 : i32, i32
  }
  func.func @transform_5(%arg0: i32, %arg1: i32) -> (i32, i32) {
    %c0_i32 = arith.constant 0 : i32
    return %arg1, %arg0 : i32, i32
  }
}

</mosaic_0001>

<bundles_post_ra>
// kernel: cnn_block_forward.3
= control target key start
LH: loop header
LB: loop body
LE: loop exit
PB: predicated region body
PF: predicated region fallthrough
CT: control target
= control target key end

     0   :  { %s641_s18 = smov 0   ;;  %s643_s19 = smov 0   ;;  %s729_s0 = inlined_call_operand.vmem [shape: f32[512,128], index: 0, kind: input, shape index: {}]   ;;  %s730_s1 = inlined_call_operand.vmem [shape: f32[1,128], index: 1, kind: input, shape index: {}]   ;;  %s731_s2 = inlined_call_operand.vmem [shape: f32[1,128], index: 2, kind: input, shape index: {}]   ;;  %s732_s3 = inlined_call_operand.vmem [shape: f32[1,128], index: 3, kind: input, shape index: {}]   ;;  %s733_s4 = inlined_call_operand.vmem [shape: f32[1,128], index: 4, kind: input, shape index: {}]   ;;  %s734_s5 = inlined_call_operand.vmem [shape: f32[512,128], index: 5, kind: output, shape index: {}]  }
   0x1   :  { %s645_s20 = smov 0  }
   0x2 LB: > { %s24_s21 = sadd.s32 1, %s605_s19  ;;  %p554_p0 = scmp.ge.s32.totalorder %s609_s20, 1  ;;  %s609_s20 = sphi %s645_s20, %s15_s20   ;;  %s605_s19 = sphi %s643_s19, %s736_s19   ;;  %s601_s18 = sphi %s641_s18, %s735_s18  }
   0x3   : > { %p25_p1 = scmp.ge.s32.totalorder %s24_s21, 4  ;;  %p239_p2 = scmp.lt.s32.totalorder %s609_s20, 5 }
   0x5   : > { %s738_s21 = smov (%p25_p1, %s24_s21), 0  ;;  %p240_p3 = pnand %p554_p0, %p239_p2 }
   0x6   : > { %v315_v0 = vld [vmem:[%s730_s1] sm:$0x1] (!%p240_p3)  ;;  %s555_s26 = sshll.u32 (!%p240_p3), %s601_s18, 4  ;;  %v345_v7 = vlaneseq (!%p240_p3) }
   0x7   : > { %243 = sbr.rel (%p240_p3) target bundleno = 47 (0x2f), region = 40  ;;  %v317_v1 = vld [vmem:[%s731_s2] sm:$0x1] (!%p240_p3)  ;;  %v316_v2 = vmul.f32 (!%p240_p3), 0.001953125, %v315_v0  ;;  %p286_p4 = scmp.lt.s32.totalorder (!%p240_p3), %s555_s26, 63 }
   0x8   : > { %v318_v3 = vmul.f32 (!%p240_p3), 0.001953125, %v317_v1  ;;  %v346_v8 = vshrl.u32 (!%p240_p3), %v345_v7, 7  ;;  %v323_v9 = vld [vmem:[%s732_s3] sm:$0x1] (!%p240_p3) }
   0x9   : > { %v319_v4 = vmul.f32 (!%p240_p3), %v316_v2, %v316_v2  ;;  %v325_v13 = vld [vmem:[%s733_s4] sm:$0x1] (!%p240_p3) }
   0xa   : > { %v347_v10 = vsub.s32 (!%p240_p3), 0, %v346_v8 }
   0xb   : > { %v320_v5 = vsub.f32 (!%p240_p3), %v318_v3, %v319_v4 }
   0xd   : > { %v321_v6 = vadd.f32 (!%p240_p3), 1e-05, %v320_v5 }
   0xe   : > { %s740_s26 = smov (!%p286_p4, %s555_s26), 63 }
   0xf   : > { %585 = vrsqrt.f32 %v321_v6  ;;  %s556_s27 = sshll.u32 %s740_s26, 3 }
  0x10   : > { %s673_s30 = scalar_lea.vmem %s729_s0, %s556_s27  ;;  %s700_s12 = scalar_lea.vmem %s734_s5, %s556_s27 }
  0x11   : > { %v328_v14 = vld [vmem:[%s673_s30] sm:$0xff]  ;;  %v329_v15 = vld [vmem:[%s673_s30 + $0x8] sm:$0xff]  ;;  %v330_v16 = vld [vmem:[%s673_s30 + $0x10] sm:$0xff] }
  0x12   : > { %v331_v17 = vld [vmem:[%s673_s30 + $0x18] sm:$0xff]  ;;  %v332_v18 = vld [vmem:[%s673_s30 + $0x20] sm:$0xff]  ;;  %v333_v21 = vld [vmem:[%s673_s30 + $0x28] sm:$0xff] }
  0x13   : > { %v334_v22 = vld [vmem:[%s673_s30 + $0x30] sm:$0xff]  ;;  %v335_v23 = vld [vmem:[%s673_s30 + $0x38] sm:$0xff]  ;;  %v336_v24 = vld [vmem:[%s673_s30 + $0x40] sm:$0xff] }
  0x14   : > { %v337_v25 = vld [vmem:[%s673_s30 + $0x48] sm:$0xff]  ;;  %v338_v26 = vld [vmem:[%s673_s30 + $0x50] sm:$0xff]  ;;  %v339_v31 = vld [vmem:[%s673_s30 + $0x58] sm:$0xff] }
  0x15   : > { %v340_v32 = vld [vmem:[%s673_s30 + $0x60] sm:$0xff]  ;;  %v341_v33 = vld [vmem:[%s673_s30 + $0x68] sm:$0xff]  ;;  %v342_v58 = vld [vmem:[%s673_s30 + $0x70] sm:$0xff] }
  0x16   : > { %v343_v59 = vld [vmem:[%s673_s30 + $0x78] sm:$0xff] }
  0x19   : > { %v586_v11 = vpop.eup %585 }
  0x1a   : > { %v324_v12 = vmul.f32 %v586_v11, %v323_v9 }
  0x1c   : > { %v326_v19 = vmul.f32 %v324_v12, %v316_v2  ;;  %v348_v20 = vrot.slane %v324_v12, %v347_v10 }
  0x1e   : > { %v327_v27 = vsub.f32 %v325_v13, %v326_v19  ;;  %v350_v28 = vmul.f32 %v348_v20, %v328_v14  ;;  %v351_v29 = vmul.f32 %v348_v20, %v329_v15  ;;  %v352_v30 = vmul.f32 %v348_v20, %v330_v16 }
  0x1f   : > { %v353_v34 = vmul.f32 %v348_v20, %v331_v17  ;;  %v354_v35 = vmul.f32 %v348_v20, %v332_v18  ;;  %v355_v36 = vmul.f32 %v348_v20, %v333_v21  ;;  %v356_v37 = vmul.f32 %v348_v20, %v334_v22 }
  0x20   : > { %v370_v38 = vrot.slane %v327_v27, %v347_v10  ;;  %v357_v39 = vmul.f32 %v348_v20, %v335_v23  ;;  %v358_v40 = vmul.f32 %v348_v20, %v336_v24  ;;  %v359_v41 = vmul.f32 %v348_v20, %v337_v25 }
  0x21   : > { %v360_v42 = vmul.f32 %v348_v20, %v338_v26  ;;  %v361_v43 = vmul.f32 %v348_v20, %v339_v31  ;;  %v362_v44 = vmul.f32 %v348_v20, %v340_v32  ;;  %v363_v45 = vmul.f32 %v348_v20, %v341_v33 }
  0x22   : > { %v372_v46 = vadd.f32 %v370_v38, %v350_v28  ;;  %v373_v47 = vadd.f32 %v370_v38, %v351_v29  ;;  %v374_v48 = vadd.f32 %v370_v38, %v352_v30  ;;  %v375_v49 = vadd.f32 %v370_v38, %v353_v34 }
  0x23   : > { %v376_v50 = vadd.f32 %v370_v38, %v354_v35  ;;  %v377_v51 = vadd.f32 %v370_v38, %v355_v36  ;;  %v378_v52 = vadd.f32 %v370_v38, %v356_v37  ;;  %v379_v53 = vadd.f32 %v370_v38, %v357_v39 }
  0x24   : > { %v388_v54 = vmax.f32 %v372_v46, 0.0  ;;  %v389_v55 = vmax.f32 %v373_v47, 0.0  ;;  %v390_v56 = vmax.f32 %v374_v48, 0.0  ;;  %v391_v57 = vmax.f32 %v375_v49, 0.0 }
  0x25   : > { %v392_v60 = vmax.f32 %v376_v50, 0.0  ;;  %v393_v61 = vmax.f32 %v377_v51, 0.0  ;;  %v394_v62 = vmax.f32 %v378_v52, 0.0  ;;  %v395_v63 = vmax.f32 %v379_v53, 0.0 }
  0x26   : > { %404 = vst [vmem:[%s700_s12] sm:$0xff] %v388_v54  ;;  %405 = vst [vmem:[%s700_s12 + $0x8] sm:$0xff] %v389_v55  ;;  %v380_v0 = vadd.f32 %v370_v38, %v358_v40  ;;  %v381_v1 = vadd.f32 %v370_v38, %v359_v41  ;;  %v382_v2 = vadd.f32 %v370_v38, %v360_v42 }
  0x27   : > { %406 = vst [vmem:[%s700_s12 + $0x10] sm:$0xff] %v390_v56  ;;  %407 = vst [vmem:[%s700_s12 + $0x18] sm:$0xff] %v391_v57  ;;  %v383_v3 = vadd.f32 %v370_v38, %v361_v43  ;;  %v384_v4 = vadd.f32 %v370_v38, %v362_v44  ;;  %v385_v5 = vadd.f32 %v370_v38, %v363_v45 }
  0x28   : > { %408 = vst [vmem:[%s700_s12 + $0x20] sm:$0xff] %v392_v60  ;;  %409 = vst [vmem:[%s700_s12 + $0x28] sm:$0xff] %v393_v61  ;;  %v364_v6 = vmul.f32 %v348_v20, %v342_v58  ;;  %v365_v7 = vmul.f32 %v348_v20, %v343_v59  ;;  %v396_v8 = vmax.f32 %v380_v0, 0.0  ;;  %v397_v9 = vmax.f32 %v381_v1, 0.0 }
  0x29   : > { %410 = vst [vmem:[%s700_s12 + $0x30] sm:$0xff] %v394_v62  ;;  %411 = vst [vmem:[%s700_s12 + $0x38] sm:$0xff] %v395_v63  ;;  %v398_v10 = vmax.f32 %v382_v2, 0.0  ;;  %v399_v11 = vmax.f32 %v383_v3, 0.0  ;;  %v400_v12 = vmax.f32 %v384_v4, 0.0  ;;  %v401_v13 = vmax.f32 %v385_v5, 0.0 }
  0x2a   : > { %v386_v14 = vadd.f32 %v370_v38, %v364_v6  ;;  %v387_v15 = vadd.f32 %v370_v38, %v365_v7  ;;  %412 = vst [vmem:[%s700_s12 + $0x40] sm:$0xff] %v396_v8  ;;  %413 = vst [vmem:[%s700_s12 + $0x48] sm:$0xff] %v397_v9 }
  0x2b   : > { %414 = vst [vmem:[%s700_s12 + $0x50] sm:$0xff] %v398_v10  ;;  %415 = vst [vmem:[%s700_s12 + $0x58] sm:$0xff] %v399_v11 }
  0x2c   : > { %416 = vst [vmem:[%s700_s12 + $0x60] sm:$0xff] %v400_v12  ;;  %417 = vst [vmem:[%s700_s12 + $0x68] sm:$0xff] %v401_v13  ;;  %v402_v16 = vmax.f32 %v386_v14, 0.0  ;;  %v403_v17 = vmax.f32 %v387_v15, 0.0 }
  0x2e   : > { %418 = vst [vmem:[%s700_s12 + $0x70] sm:$0xff] %v402_v16  ;;  %419 = vst [vmem:[%s700_s12 + $0x78] sm:$0xff] %v403_v17 }
  0x2f PF: > { %s15_s20 = sadd.s32 1, %s609_s20   ;;  %s735_s18 = smov %s605_s19 }
  0x30   : > { %p12_p5 = scmp.ge.s32.totalorder %s15_s20, 6   ;;  %s736_s19 = smov %s738_s21 }
  0x32   :  { %14 = sbr.rel (!%p12_p5) target bundleno = 2 (0x2), region = 82 }

// kernel: cnn_block_forward.2
= control target key start
LH: loop header
LB: loop body
LE: loop exit
PB: predicated region body
PF: predicated region fallthrough
CT: control target
= control target key end

     0   :  { %s887_s15 = smov 0   ;;  %s889_s16 = smov 0   ;;  %s990_s0 = inlined_call_operand.vmem [shape: bf16[512,128], index: 0, kind: input, shape index: {}]   ;;  %s991_s1 = inlined_call_operand.vmem [shape: bf16[128,128], index: 1, kind: input, shape index: {}]   ;;  %s992_s2 = inlined_call_operand.vmem [shape: f32[512,128], index: 2, kind: output, shape index: {0}]   ;;  %s993_s3 = inlined_call_operand.vmem [shape: f32[1,128], index: 3, kind: output, shape index: {1}]   ;;  %s994_s4 = inlined_call_operand.vmem [shape: f32[1,128], index: 4, kind: output, shape index: {2}]  }
   0x1   :  { %s891_s17 = smov 0  }
   0x2 LB: > { %s24_s18 = sadd.s32 1, %s855_s16  ;;  %p706_p0 = scmp.ge.s32.totalorder %s859_s17, 1  ;;  %s859_s17 = sphi %s891_s17, %s15_s17   ;;  %s855_s16 = sphi %s889_s16, %s996_s16   ;;  %s851_s15 = sphi %s887_s15, %s995_s15  }
   0x3   : > { %p25_p1 = scmp.ge.s32.totalorder %s24_s18, 4  ;;  %p191_p2 = scmp.lt.s32.totalorder %s859_s17, 5 }
   0x5   : > { %s998_s18 = smov (%p25_p1, %s24_s18), 0  ;;  %p192_p3 = pnand %p706_p0, %p191_p2 }
   0x6   : > { %s707_s19 = sshll.u32 (!%p192_p3), %s851_s15, 4  ;;  %p711_p5 = scmp.ne.s32.totalorder (!%p192_p3), %s851_s15, 0 }
   0x7   : > { %195 = sbr.rel (%p192_p3) target bundleno = 316 (0x13c), region = 28  ;;  %p231_p4 = scmp.lt.s32.totalorder (!%p192_p3), %s707_s19, 63 }
   0xe   : > { %s1000_s19 = smov (!%p231_p4, %s707_s19), 63  ;;  %259 = sbr.rel (%p711_p5) target bundleno = 21 (0x15), region = 32 }
   0xf   : > { %s708_s20 = sshll.u32 %s1000_s19, 2  ;;  %s710_s21 = sshll.u32 %s1000_s19, 3  ;;  %v861_v0 = vmov (!%p711_p5), 0.0  }
  0x10   : > { %s908_s24 = scalar_lea.vmem %s990_s0, %s708_s20  ;;  %s913_s27 = scalar_lea.vmem %s992_s2, %s710_s21  ;;  %260 = vst [vmem:[%s993_s3] sm:$0x1] (!%p711_p5), %v861_v0  ;;  %261 = vst [vmem:[%s994_s4] sm:$0x1] (!%p711_p5), %v861_v0 }
  0x15 PF: > { %v821_v1 = vld [vmem:[%s991_s1] sm:$0xff]   ;;  %v822_v2 = vld [vmem:[%s991_s1 + $0x8] sm:$0xff]   ;;  %v823_v3 = vld [vmem:[%s991_s1 + $0x10] sm:$0xff]  }
  0x16   : > { %748 = vmatprep.subr.bf16.mxu0 %v821_v1  ;;  %780 = vmatprep.subr.bf16.mxu1 %v821_v1  ;;  %v824_v4 = vld [vmem:[%s991_s1 + $0x18] sm:$0xff]   ;;  %v829_v5 = vld [vmem:[%s908_s24] sm:$0xff]   ;;  %v826_v8 = vld [vmem:[%s991_s1 + $0x28] sm:$0xff]  }
  0x17   : > { %749 = vmatpush3.bf16.msra.mxu0 %v821_v1  ;;  %788 = vmatpush3.bf16.msra.mxu1 %v821_v1  ;;  %v825_v6 = vld [vmem:[%s991_s1 + $0x20] sm:$0xff]   ;;  %v827_v9 = vld [vmem:[%s991_s1 + $0x30] sm:$0xff]   ;;  %v828_v10 = vld [vmem:[%s991_s1 + $0x38] sm:$0xff]  }
  0x18   : > { %750 = vmatprep.subr.bf16.mxu0 %v822_v2  ;;  %781 = vmatprep.subr.bf16.mxu1 %v822_v2  ;;  %v833_v7 = vld [vmem:[%s908_s24 + $0x20] sm:$0xff]   ;;  %v830_v11 = vld [vmem:[%s908_s24 + $0x8] sm:$0xff]   ;;  %v831_v13 = vld [vmem:[%s908_s24 + $0x10] sm:$0xff]  }
  0x19   : > { %764 = vmatprep.mubr.bf16.mxu0 %v829_v5  ;;  %772 = vmatprep.mubr.bf16.mxu1 %v833_v7  ;;  %v834_v12 = vld [vmem:[%s908_s24 + $0x28] sm:$0xff]   ;;  %v835_v14 = vld [vmem:[%s908_s24 + $0x30] sm:$0xff]   ;;  %v832_v15 = vld [vmem:[%s908_s24 + $0x18] sm:$0xff]  }
  0x1a   : > { %v836_v16 = vld [vmem:[%s908_s24 + $0x38] sm:$0xff]  }
  0x1b   : > { %751 = vmatpush3.bf16.msra.mxu0 %v822_v2  ;;  %789 = vmatpush3.bf16.msra.mxu1 %v822_v2 }
  0x1c   : > { %752 = vmatprep.subr.bf16.mxu0 %v823_v3  ;;  %782 = vmatprep.subr.bf16.mxu1 %v823_v3 }
  0x1f   : > { %753 = vmatpush3.bf16.msra.mxu0 %v823_v3  ;;  %790 = vmatpush3.bf16.msra.mxu1 %v823_v3 }
  0x20   : > { %754 = vmatprep.subr.bf16.mxu0 %v824_v4  ;;  %783 = vmatprep.subr.bf16.mxu1 %v824_v4 }
  0x23   : > { %755 = vmatpush3.bf16.msra.mxu0 %v824_v4  ;;  %791 = vmatpush3.bf16.msra.mxu1 %v824_v4 }
  0x24   : > { %756 = vmatprep.subr.bf16.mxu0 %v825_v6  ;;  %784 = vmatprep.subr.bf16.mxu1 %v825_v6 }
  0x27   : > { %757 = vmatpush3.bf16.msra.mxu0 %v825_v6  ;;  %792 = vmatpush3.bf16.msra.mxu1 %v825_v6 }
  0x28   : > { %758 = vmatprep.subr.bf16.mxu0 %v826_v8  ;;  %785 = vmatprep.subr.bf16.mxu1 %v826_v8 }
  0x2b   : > { %759 = vmatpush3.bf16.msra.mxu0 %v826_v8  ;;  %793 = vmatpush3.bf16.msra.mxu1 %v826_v8 }
  0x2c   : > { %760 = vmatprep.subr.bf16.mxu0 %v827_v9  ;;  %786 = vmatprep.subr.bf16.mxu1 %v827_v9 }
  0x2f   : > { %761 = vmatpush3.bf16.msra.mxu0 %v827_v9  ;;  %794 = vmatpush3.bf16.msra.mxu1 %v827_v9 }
  0x30   : > { %762 = vmatprep.subr.bf16.mxu0 %v828_v10  ;;  %787 = vmatprep.subr.bf16.mxu1 %v828_v10 }
  0x33   : > { %763 = vmatpush3.bf16.msra.mxu0 %v828_v10  ;;  %795 = vmatpush3.bf16.msra.mxu1 %v828_v10 }
  0x36   : > { %765 = vmatmul.mubr.bf16.vlgmr.msra.gmra.mrb[0].mxu0 %v830_v11  ;;  %773 = vmatmul.mubr.bf16.vlgmr.msra.gmra.mrb[0].mxu1 %v834_v12 }
  0x37   : > { %768 = vmatprep.mubr.bf16.mxu0 %v831_v13  ;;  %776 = vmatprep.mubr.bf16.mxu1 %v835_v14 }
  0x3e   : > { %769 = vmatmul.mubr.bf16.gmra.mrb[4].mxu0 %v832_v15  ;;  %777 = vmatmul.mubr.bf16.gmra.mrb[4].mxu1 %v836_v16 }
 0x109   : > { %v766_v17 = vpop.f32.mrb[0].mxu0  ;;  %v774_v18 = vpop.f32.mrb[0].mxu1 }
 0x10a   : > { %489 = vst [vmem:[%s913_s27 + $0x10] sm:$0xff] %v766_v17  ;;  %v424_v19 = vpop.f32.mrb[1].mxu0  ;;  %497 = vst [vmem:[%s913_s27 + $0x50] sm:$0xff] %v774_v18  ;;  %v456_v20 = vpop.f32.mrb[1].mxu1  ;;  %v530_v28 = vmul.f32 %v766_v17, %v766_v17  ;;  %v538_v60 = vmul.f32 %v774_v18, %v774_v18 }
 0x10b   : > { %487 = vst [vmem:[%s913_s27] sm:$0xff] %v424_v19  ;;  %v767_v21 = vpop.f32.mrb[2].mxu0  ;;  %495 = vst [vmem:[%s913_s27 + $0x40] sm:$0xff] %v456_v20  ;;  %v775_v22 = vpop.f32.mrb[2].mxu1  ;;  %v528_v25 = vmul.f32 %v424_v19, %v424_v19  ;;  %v536_v54 = vmul.f32 %v456_v20, %v456_v20 }
 0x10c   : > { %490 = vst [vmem:[%s913_s27 + $0x18] sm:$0xff] %v767_v21  ;;  %v427_v23 = vpop.f32.mrb[3].mxu0  ;;  %498 = vst [vmem:[%s913_s27 + $0x58] sm:$0xff] %v775_v22  ;;  %v459_v24 = vpop.f32.mrb[3].mxu1  ;;  %v531_v31 = vmul.f32 %v767_v21, %v767_v21  ;;  %v539_v63 = vmul.f32 %v775_v22, %v775_v22 }
 0x10d   : > { %488 = vst [vmem:[%s913_s27 + $0x8] sm:$0xff] %v427_v23  ;;  %v504_v26 = vadd.f32 %v427_v23, %v424_v19  ;;  %v529_v27 = vmul.f32 %v427_v23, %v427_v23  ;;  %496 = vst [vmem:[%s913_s27 + $0x48] sm:$0xff] %v459_v24  ;;  %v537_v59 = vmul.f32 %v459_v24, %v459_v24 }
 0x10f   : > { %v505_v29 = vadd.f32 %v766_v17, %v504_v26  ;;  %v544_v30 = vadd.f32 %v529_v27, %v528_v25  ;;  %v527_v27 = vld [vmem:[%s994_s4] sm:$0x1] }
 0x111   : > { %v545_v32 = vadd.f32 %v544_v30, %v530_v28  ;;  %v770_v33 = vpop.f32.mrb[4].mxu0  ;;  %v506_v34 = vadd.f32 %v767_v21, %v505_v29  ;;  %v778_v35 = vpop.f32.mrb[4].mxu1 }
 0x112   : > { %493 = vst [vmem:[%s913_s27 + $0x30] sm:$0xff] %v770_v33  ;;  %v440_v36 = vpop.f32.mrb[5].mxu0  ;;  %501 = vst [vmem:[%s913_s27 + $0x70] sm:$0xff] %v778_v35  ;;  %v472_v37 = vpop.f32.mrb[5].mxu1  ;;  %v534_v48 = vmul.f32 %v770_v33, %v770_v33  ;;  %v542_v8 = vmul.f32 %v778_v35, %v778_v35 }
 0x113   : > { %491 = vst [vmem:[%s913_s27 + $0x20] sm:$0xff] %v440_v36  ;;  %v507_v38 = vadd.f32 %v506_v34, %v440_v36  ;;  %v532_v39 = vmul.f32 %v440_v36, %v440_v36  ;;  %v546_v40 = vadd.f32 %v545_v32, %v531_v31  ;;  %v771_v41 = vpop.f32.mrb[6].mxu0  ;;  %499 = vst [vmem:[%s913_s27 + $0x60] sm:$0xff] %v472_v37  ;;  %v779_v42 = vpop.f32.mrb[6].mxu1 }
 0x114   : > { %494 = vst [vmem:[%s913_s27 + $0x38] sm:$0xff] %v771_v41  ;;  %v443_v43 = vpop.f32.mrb[7].mxu0  ;;  %502 = vst [vmem:[%s913_s27 + $0x78] sm:$0xff] %v779_v42  ;;  %v475_v44 = vpop.f32.mrb[7].mxu1  ;;  %v535_v51 = vmul.f32 %v771_v41, %v771_v41  ;;  %v540_v2 = vmul.f32 %v472_v37, %v472_v37  ;;  %v543_v11 = vmul.f32 %v779_v42, %v779_v42 }
 0x115   : > { %v547_v45 = vadd.f32 %v546_v40, %v532_v39  ;;  %492 = vst [vmem:[%s913_s27 + $0x28] sm:$0xff] %v443_v43  ;;  %v508_v46 = vadd.f32 %v507_v38, %v443_v43  ;;  %v533_v47 = vmul.f32 %v443_v43, %v443_v43  ;;  %500 = vst [vmem:[%s913_s27 + $0x68] sm:$0xff] %v475_v44 }
 0x116   : > { %v541_v7 = vmul.f32 %v475_v44, %v475_v44 }
 0x117   : > { %v509_v49 = vadd.f32 %v770_v33, %v508_v46  ;;  %v548_v50 = vadd.f32 %v547_v45, %v533_v47 }
 0x119   : > { %v549_v52 = vadd.f32 %v548_v50, %v534_v48  ;;  %v510_v53 = vadd.f32 %v771_v41, %v509_v49 }
 0x11b   : > { %v511_v55 = vadd.f32 %v510_v53, %v456_v20  ;;  %v550_v56 = vadd.f32 %v549_v52, %v535_v51 }
 0x11d   : > { %v551_v57 = vadd.f32 %v550_v56, %v536_v54  ;;  %v512_v58 = vadd.f32 %v511_v55, %v459_v24  ;;  %v503_v24 = vld [vmem:[%s993_s3] sm:$0x1] }
 0x11f   : > { %v513_v61 = vadd.f32 %v774_v18, %v512_v58  ;;  %v552_v62 = vadd.f32 %v551_v57, %v537_v59 }
 0x121   : > { %v553_v0 = vadd.f32 %v552_v62, %v538_v60  ;;  %v514_v1 = vadd.f32 %v775_v22, %v513_v61 }
 0x123   : > { %v515_v3 = vadd.f32 %v514_v1, %v472_v37  ;;  %v554_v4 = vadd.f32 %v553_v0, %v539_v63 }
 0x125   : > { %v555_v5 = vadd.f32 %v554_v4, %v540_v2  ;;  %v516_v6 = vadd.f32 %v515_v3, %v475_v44 }
 0x127   : > { %v517_v9 = vadd.f32 %v778_v35, %v516_v6  ;;  %v556_v10 = vadd.f32 %v555_v5, %v541_v7 }
 0x129   : > { %v518_v12 = vadd.f32 %v779_v42, %v517_v9  ;;  %v557_v13 = vadd.f32 %v556_v10, %v542_v8 }
 0x12b   : > { %v519_v14 = vrot.slane %v518_v12, 4  ;;  %v558_v15 = vadd.f32 %v557_v13, %v543_v11 }
 0x12d   : > { %v520_v16 = vadd.f32 %v519_v14, %v518_v12  ;;  %v559_v17 = vrot.slane %v558_v15, 4 }
 0x12f   : > { %v521_v18 = vrot.slane %v520_v16, 2  ;;  %v560_v19 = vadd.f32 %v559_v17, %v558_v15 }
 0x131   : > { %v522_v20 = vadd.f32 %v521_v18, %v520_v16  ;;  %v561_v21 = vrot.slane %v560_v19, 2 }
 0x133   : > { %v523_v22 = vrot.slane %v522_v20, 1  ;;  %v562_v23 = vadd.f32 %v561_v21, %v560_v19 }
 0x135   : > { %v524_v25 = vadd.f32 %v523_v22, %v522_v20  ;;  %v563_v26 = vrot.slane %v562_v23, 1 }
 0x137   : > { %v525_v28 = vadd.f32 %v524_v25, %v503_v24  ;;  %v564_v29 = vadd.f32 %v563_v26, %v562_v23 }
 0x139   : > { %526 = vst [vmem:[%s993_s3] sm:$0x1] %v525_v28  ;;  %v565_v30 = vadd.f32 %v564_v29, %v527_v27 }
 0x13b   : > { %566 = vst [vmem:[%s994_s4] sm:$0x1] %v565_v30 }
 0x13c PF: > { %s15_s17 = sadd.s32 1, %s859_s17   ;;  %s995_s15 = smov %s855_s16 }
 0x13d   : > { %p12_p6 = scmp.ge.s32.totalorder %s15_s17, 6   ;;  %s996_s16 = smov %s998_s18 }
 0x13f   :  { %14 = sbr.rel (!%p12_p6) target bundleno = 2 (0x2), region = 89 }

</bundles_post_ra>
